<compile_context>
chip_gen: v7x
topology: tpu7x:2x2x1
jax: 0.10.0
libtpu: 0.0.40
codegen_flags: <defaults>
</compile_context>

<pallas_src>
import functools

import jax
import jax.numpy as jnp
from jax import lax
from jax.experimental import pallas as pl
from jax.experimental.pallas import tpu as pltpu


def _nonlocal_kernel(xs_ref, wptg_ref, wmask_ref, o_ref, ptg_ref, z_ref, *,
                     tj, exp_bf16):
    """One (batch, j-tile) grid step.

    xs_ref   : (2C, HW2)  input in stacked-half layout (row = 2*cin + half).
    wptg_ref : (3C, 2C)   bf16 stacked + half-expanded phi/theta/g weights.
    wmask_ref: (2C, C)    bf16 half-expanded conv_mask weight.
    o_ref    : (2C, HW2)  output in stacked-half layout.
    ptg_ref  : (3C, HW2)  bf16 scratch holding P/T/G projections (per batch).
    z_ref    : (C, HW2)   f32 accumulator for the value product.
    """
    ji = pl.program_id(1)
    two_c, hw2 = xs_ref.shape
    c = two_c // 2

    # ---- first j-step of this batch: projections + accumulator init --------
    @pl.when(ji == 0)
    def _():
        # phi/theta/g 1x1 convs == one fused channel matmul.  bf16 x bf16 MXU
        # operands (native single-pass) with f32 accumulation.
        xs_bf = xs_ref[...].astype(jnp.bfloat16)
        ptg = jnp.dot(wptg_ref[...], xs_bf,
                      preferred_element_type=jnp.float32)             # (3C, HW2)
        ptg_ref[...] = ptg.astype(jnp.bfloat16)
        z_ref[...] = jnp.zeros_like(z_ref)

    # Stacked projections (bf16 MXU operands; all accumulation in f32).
    # NOTE: keep production C a multiple of 16 so these sublane slices are
    # aligned views (no VMEM re-tiling copies per j-step).
    t_all = ptg_ref[c:2 * c, :]                                       # (C, HW2)
    if tj == hw2:                                                     # single j-tile
        p_j = ptg_ref[0:c, :]
        g_j = ptg_ref[2 * c:3 * c, :]
    else:
        j0 = ji * tj
        if tj % 128 == 0:
            j0 = pl.multiple_of(j0, 128)
        p_j = ptg_ref[0:c, pl.ds(j0, tj)]
        g_j = ptg_ref[2 * c:3 * c, pl.ds(j0, tj)]

    # attn^T[j, i] = sum_k P[k, j] * T[k, i]   -- single K=C contraction.
    # (lhs contracted on dim 0 == transposed-lhs MXU matmul; no XLU transpose.)
    dn = (((0,), (0,)), ((), ()))
    attn_t = lax.dot_general(p_j, t_all, dn,
                             preferred_element_type=jnp.float32)      # (tj, HW2)

    # Softmax over i (last axis) == PyTorch Softmax(dim=1) on attn; row-local,
    # so no online softmax is needed across j-tiles.  Max stays in f32; the
    # exponent runs in bf16 on chips with a bf16 EUP (v6e/v7x), f32 on v5e.
    m = jnp.max(attn_t, axis=-1, keepdims=True)
    if exp_bf16:
        e = jnp.exp((attn_t - m).astype(jnp.bfloat16))                # bf16 EUP rate
        s = jnp.sum(e, axis=-1, keepdims=True, dtype=jnp.float32)     # f32 row-sum
        r = pl.reciprocal(s, approx=True)                             # EUP slot
        sm_t = e * r.astype(jnp.bfloat16)                             # (tj, HW2) bf16
    else:
        e = jnp.exp(attn_t - m)                                       # f32 (v5e)
        s = jnp.sum(e, axis=-1, keepdims=True)
        r = pl.reciprocal(s, approx=True)
        sm_t = (e * r).astype(jnp.bfloat16)

    # Value product, accumulated over j-tiles: Z[k, i] += G[k, j] * attn^T_sm[j, i].
    z_ref[...] += jnp.dot(g_j, sm_t, preferred_element_type=jnp.float32)

    # ---- last j-step: conv_mask (1x1) + residual, lane-dense full-tile store
    @pl.when(ji == pl.num_programs(1) - 1)
    def _():
        mask = jnp.dot(wmask_ref[...], z_ref[...].astype(jnp.bfloat16),
                       preferred_element_type=jnp.float32)            # (2C, HW2)
        o_ref[...] = (mask + xs_ref[...].astype(jnp.float32)).astype(o_ref.dtype)


def _expand_half(wt):
    """(out, in) -> (2*out, 2*in) with W[2a+h, 2b+h'] = wt[a, b] * (h == h').

    Folds PyTorch's ".view(b, c, -1)" half-split into the 1x1-conv weights so
    the kernel can operate directly on the stacked-half layout.
    """
    o, i = wt.shape
    eye2 = jnp.eye(2, dtype=jnp.float32)
    return jnp.einsum('oi,hk->ohik', wt.astype(jnp.float32), eye2).reshape(2 * o, 2 * i)


def _tpu_generation():
    """Returns (vmem_capacity_bytes, has_bf16_vector_units) for the local TPU."""
    kind = ""
    try:
        kind = jax.devices()[0].device_kind.lower()
    except Exception:
        pass
    try:
        vmem_cap = int(pltpu.get_tpu_info().vmem_capacity_bytes)
    except Exception:
        vmem_cap = 64 * 1024 * 1024 if "7" in kind else 128 * 1024 * 1024
    old_gen = any(t in kind for t in ("v2", "v3", "v4", "v5"))
    return vmem_cap, (not old_gen)


def _pick_j_tile(hw2, quad_budget_bytes, bytes_per_elem):
    """Largest divisor of hw2 (preferring multiples of 128) whose (tj, hw2)
    quadratic softmax temporaries fit the VMEM budget."""
    max_rows = max(int(quad_budget_bytes // max(1, bytes_per_elem * hw2)), 1)
    if max_rows >= hw2:
        return hw2
    d = (max_rows // 128) * 128
    while d >= 128:                    # lane-aligned divisors, largest first
        if hw2 % d == 0:
            return d
        d -= 128
    d = min(max_rows, hw2)             # fallback: any divisor within budget
    while d > 1:
        if hw2 % d == 0:
            return d
        d -= 1
    return 1


def nonlocal_pallas(x, w_phi, w_theta, w_g, w_mask):
    b, c, h, w = x.shape
    hw = h * w
    assert c % 2 == 0 and hw % 2 == 0
    hw2 = hw // 2

    # Stacked-half layout (pure row-major reshape):
    #   xs[b, 2*cin + half, j] = x[b, cin, half*hw2 + j]
    xs = x.reshape(b, 2 * c, hw2)

    # Fused + half-expanded weights, pre-cast to bf16 (host/XLA side, tiny).
    w_ptg = jnp.concatenate(
        [_expand_half(w_phi), _expand_half(w_theta), _expand_half(w_g)],
        axis=0).astype(jnp.bfloat16)                                   # (3C, 2C)
    w_mask_x = _expand_half(w_mask).astype(jnp.bfloat16)               # (2C, C)

    # ---- generation-aware VMEM budgeting & j-tiling --------------------------
    vmem_cap, exp_bf16 = _tpu_generation()
    itemsize = jnp.dtype(x.dtype).itemsize
    blk_bytes = 2 * c * hw2 * itemsize                       # one (2C, HW2) block
    small_vmem = vmem_cap < 96 * 1024 * 1024                 # v7x: 64 MiB / TC
    # Single-buffer the batch-resident xs/out blocks on small-VMEM parts (their
    # block index only changes with the batch axis; one exposed HBM transfer
    # per batch is negligible vs nj compute steps).
    io_buf = 1 if (small_vmem and blk_bytes > 2 * 1024 * 1024) else 2

    fixed = (2 * io_buf * blk_bytes                          # xs in + out blocks
             + 3 * c * hw2 * 2 + c * hw2 * 4                 # ptg bf16 + z f32 scratch
             + 2 * (3 * c * 2 * c + 2 * c * c) * 2)          # bf16 weights (2x buffered)
    budget = int(vmem_cap * 0.85)
    bytes_per_quad = 10 if exp_bf16 else 12                  # attn_t + exp + sm (+slack)
    quad_budget = max(budget - fixed, 1 << 20)
    tj = _pick_j_tile(hw2, quad_budget, bytes_per_quad)
    nj = hw2 // tj

    need = fixed + tj * hw2 * bytes_per_quad
    if tj < hw2:
        need += 2 * c * tj * 2                               # p_j / g_j slice copies
    vmem_limit = int(min(0.9 * vmem_cap, max(32 * 1024 * 1024, 1.3 * need)))

    io_kwargs = dict(pipeline_mode=pl.Buffered(1)) if io_buf == 1 else {}

    kernel = functools.partial(_nonlocal_kernel, tj=tj, exp_bf16=exp_bf16)

    out = pl.pallas_call(
        kernel,
        out_shape=jax.ShapeDtypeStruct((b, 2 * c, hw2), x.dtype),
        grid=(b, nj),
        in_specs=[
            pl.BlockSpec((None, 2 * c, hw2), lambda bi, ji: (bi, 0, 0), **io_kwargs),
            pl.BlockSpec((3 * c, 2 * c), lambda bi, ji: (0, 0)),
            pl.BlockSpec((2 * c, c), lambda bi, ji: (0, 0)),
        ],
        out_specs=pl.BlockSpec((None, 2 * c, hw2), lambda bi, ji: (bi, 0, 0),
                               **io_kwargs),
        scratch_shapes=[
            pltpu.VMEM((3 * c, hw2), jnp.bfloat16),   # stacked P/T/G projections
            pltpu.VMEM((c, hw2), jnp.float32),        # value-product accumulator
        ],
        compiler_params=pltpu.CompilerParams(
            dimension_semantics=("parallel", "arbitrary"),
            vmem_limit_bytes=vmem_limit,
        ),
    )(xs, w_ptg, w_mask_x)
    return out.reshape(b, c, h, w)


def nonlocal_ref(x, w_phi, w_theta, w_g, w_mask):
    """Pure-JAX f32 reference reproducing the PyTorch forward (incl. the .view quirk)."""
    b, c, h, w = x.shape
    c2 = c // 2
    xf = x.reshape(b, c, h * w).astype(jnp.float32)
    phi = jnp.einsum('oc,bcs->bos', w_phi, xf)      # (b, c2, hw)
    theta = jnp.einsum('oc,bcs->bos', w_theta, xf)
    g = jnp.einsum('oc,bcs->bos', w_g, xf)
    x_phi = phi.reshape(b, c, -1)                   # (b, c, hw/2)
    x_theta = theta.reshape(b, c, -1).transpose(0, 2, 1)
    x_g = g.reshape(b, c, -1).transpose(0, 2, 1)
    attn = jnp.einsum('bic,bcj->bij', x_theta, x_phi)
    attn = jax.nn.softmax(attn, axis=1)             # PyTorch Softmax(dim=1)
    y = jnp.einsum('bij,bjc->bic', attn, x_g)       # (b, hw/2, c)
    y = y.transpose(0, 2, 1).reshape(b, c2, h * w)
    mask = jnp.einsum('oc,bcs->bos', w_mask, y).reshape(b, c, h, w)
    return mask + x.astype(jnp.float32)


if __name__ == "__main__":
    B, C, H, W = 2, 4, 16, 16
    C2 = C // 2

    key = jax.random.PRNGKey(0)
    kx, k1, k2, k3, k4 = jax.random.split(key, 5)
    x = jax.random.normal(kx, (B, C, H, W), dtype=jnp.float32)
    # 1x1 conv weights (out_ch, in_ch); kernel-size-1 convs == channel matmuls.
    w_phi = jax.random.normal(k1, (C2, C), dtype=jnp.float32) / jnp.sqrt(C)
    w_theta = jax.random.normal(k2, (C2, C), dtype=jnp.float32) / jnp.sqrt(C)
    w_g = jax.random.normal(k3, (C2, C), dtype=jnp.float32) / jnp.sqrt(C)
    w_mask = jax.random.normal(k4, (C, C2), dtype=jnp.float32) / jnp.sqrt(C2)

    out = nonlocal_pallas(x, w_phi, w_theta, w_g, w_mask)
    out = jax.block_until_ready(out)

    ref = nonlocal_ref(x, w_phi, w_theta, w_g, w_mask)
    assert out.shape == (B, C, H, W)
    # Tolerance sized for bf16 MXU operands (P/T/G, softmax, weights) with f32
    # accumulation — inference-grade, not bitwise vs the PyTorch module.
    err = jnp.max(jnp.abs(out - ref))
    assert jnp.allclose(out, ref, atol=1e-1, rtol=1e-2), f"max abs err {err}"
    print("KERNEL_OK")
</pallas_src>

<mosaic_0001>
module attributes {stable_mosaic.version = 11 : i64} {
  func.func @_nonlocal_kernel(%arg0: i32, %arg1: i32, %arg2: memref<1x8x128xf32, #tpu.memory_space<vmem>>, %arg3: memref<12x8xbf16, #tpu.memory_space<vmem>>, %arg4: memref<8x4xbf16, #tpu.memory_space<vmem>>, %arg5: memref<1x8x128xf32, #tpu.memory_space<vmem>>, %arg6: memref<12x128xbf16, #tpu.memory_space<vmem>>, %arg7: memref<4x128xf32, #tpu.memory_space<vmem>>) attributes {dimension_semantics = [#tpu.dimension_semantics<parallel>, #tpu.dimension_semantics<arbitrary>], iteration_bounds = array<i64: 2, 1>, scalar_prefetch = 0 : i64, scratch_operands = 2 : i64, tpu.core_type = #tpu.core_type<tc>, window_params = [{transform_indices = @transform_0, window_bounds = array<i64: 1, 8, 128>}, {pipeline_mode = #tpu.pipeline_mode<synchronous>, transform_indices = @transform_1, window_bounds = array<i64: 12, 8>}, {pipeline_mode = #tpu.pipeline_mode<synchronous>, transform_indices = @transform_2, window_bounds = array<i64: 8, 4>}, {transform_indices = @transform_3, window_bounds = array<i64: 1, 8, 128>}]} {
    %c0_i32 = arith.constant 0 : i32
    %0 = arith.cmpi eq, %arg1, %c0_i32 : i32
    %1 = arith.extui %0 : i1 to i32
    %c0_i32_0 = arith.constant 0 : i32
    %2 = arith.cmpi ne, %1, %c0_i32_0 : i32
    scf.if %2 {
      %c0_13 = arith.constant 0 : index
      %c0_14 = arith.constant 0 : index
      %c0_15 = arith.constant 0 : index
      %27 = vector.load %arg2[%c0_13, %c0_14, %c0_15] : memref<1x8x128xf32, #tpu.memory_space<vmem>>, vector<1x8x128xf32>
      %28 = vector.shape_cast %27 : vector<1x8x128xf32> to vector<8x128xf32>
      %29 = arith.truncf %28 : vector<8x128xf32> to vector<8x128xbf16>
      %c0_16 = arith.constant 0 : index
      %c0_17 = arith.constant 0 : index
      %30 = vector.load %arg3[%c0_16, %c0_17] : memref<12x8xbf16, #tpu.memory_space<vmem>>, vector<12x8xbf16>
      %cst_18 = arith.constant dense<0.000000e+00> : vector<12x128xf32>
      %31 = tpu.matmul %30, %29, %cst_18 {dimension_numbers = #tpu.dot_dimension_numbers<[1], [0], [0], [1], [0, 0, 1, 1], [], []>} : vector<12x8xbf16>, vector<8x128xbf16>, vector<12x128xf32> -> vector<12x128xf32>
      %32 = arith.truncf %31 : vector<12x128xf32> to vector<12x128xbf16>
      %c0_19 = arith.constant 0 : index
      %c0_20 = arith.constant 0 : index
      %33 = vector.load %arg6[%c0_19, %c0_20] : memref<12x128xbf16, #tpu.memory_space<vmem>>, vector<12x128xbf16>
      tpu.vector_store %arg6[%c0_19, %c0_20], %32 {strides = array<i32>} : memref<12x128xbf16, #tpu.memory_space<vmem>>, vector<12x128xbf16>,
      %cst_21 = arith.constant 0.000000e+00 : f32
      %34 = vector.broadcast %cst_21 : f32 to vector<4x128xf32>
      %c0_22 = arith.constant 0 : index
      %c0_23 = arith.constant 0 : index
      %35 = vector.load %arg7[%c0_22, %c0_23] : memref<4x128xf32, #tpu.memory_space<vmem>>, vector<4x128xf32>
      tpu.vector_store %arg7[%c0_22, %c0_23], %34 {strides = array<i32>} : memref<4x128xf32, #tpu.memory_space<vmem>>, vector<4x128xf32>,
    } else {
    }
    %c4 = arith.constant 4 : index
    %c0 = arith.constant 0 : index
    %3 = vector.load %arg6[%c4, %c0] : memref<12x128xbf16, #tpu.memory_space<vmem>>, vector<4x128xbf16>
    %c0_1 = arith.constant 0 : index
    %c0_2 = arith.constant 0 : index
    %4 = vector.load %arg6[%c0_1, %c0_2] : memref<12x128xbf16, #tpu.memory_space<vmem>>, vector<4x128xbf16>
    %c8 = arith.constant 8 : index
    %c0_3 = arith.constant 0 : index
    %5 = vector.load %arg6[%c8, %c0_3] : memref<12x128xbf16, #tpu.memory_space<vmem>>, vector<4x128xbf16>
    %cst = arith.constant dense<0.000000e+00> : vector<128x128xf32>
    %6 = tpu.matmul %4, %3, %cst {dimension_numbers = #tpu.dot_dimension_numbers<[0], [0], [1], [1], [0, 1, 1, 1], [], []>} : vector<4x128xbf16>, vector<4x128xbf16>, vector<128x128xf32> -> vector<128x128xf32>
    %cst_4 = arith.constant dense<0xFF800000> : vector<128xf32>
    %7 = vector.multi_reduction <maximumf>, %6, %cst_4 [1] : vector<128x128xf32> to vector<128xf32>
    %8 = vector.shape_cast %7 : vector<128xf32> to vector<128x1xf32>
    %9 = vector.broadcast %8 : vector<128x1xf32> to vector<128x128xf32>
    %10 = arith.subf %6, %9 : vector<128x128xf32>
    %11 = arith.truncf %10 : vector<128x128xf32> to vector<128x128xbf16>
    %12 = math.exp %11 : vector<128x128xbf16>
    %13 = arith.extf %12 : vector<128x128xbf16> to vector<128x128xf32>
    %cst_5 = arith.constant dense<0.000000e+00> : vector<128xf32>
    %14 = vector.multi_reduction <add>, %13, %cst_5 [1] : vector<128x128xf32> to vector<128xf32>
    %15 = vector.shape_cast %14 : vector<128xf32> to vector<128x1xf32>
    %16 = tpu.reciprocal %15 {approx = true} : vector<128x1xf32> -> vector<128x1xf32>
    %17 = arith.truncf %16 : vector<128x1xf32> to vector<128x1xbf16>
    %18 = vector.broadcast %17 : vector<128x1xbf16> to vector<128x128xbf16>
    %19 = arith.mulf %12, %18 : vector<128x128xbf16>
    %c0_6 = arith.constant 0 : index
    %c0_7 = arith.constant 0 : index
    %20 = vector.load %arg7[%c0_6, %c0_7] : memref<4x128xf32, #tpu.memory_space<vmem>>, vector<4x128xf32>
    %cst_8 = arith.constant dense<0.000000e+00> : vector<4x128xf32>
    %21 = tpu.matmul %5, %19, %cst_8 {dimension_numbers = #tpu.dot_dimension_numbers<[1], [0], [0], [1], [0, 0, 1, 1], [], []>} : vector<4x128xbf16>, vector<128x128xbf16>, vector<4x128xf32> -> vector<4x128xf32>
    %22 = arith.addf %20, %21 : vector<4x128xf32>
    %c0_9 = arith.constant 0 : index
    %c0_10 = arith.constant 0 : index
    %23 = vector.load %arg7[%c0_9, %c0_10] : memref<4x128xf32, #tpu.memory_space<vmem>>, vector<4x128xf32>
    tpu.vector_store %arg7[%c0_9, %c0_10], %22 {strides = array<i32>} : memref<4x128xf32, #tpu.memory_space<vmem>>, vector<4x128xf32>,
    %c0_i32_11 = arith.constant 0 : i32
    %24 = arith.cmpi eq, %arg1, %c0_i32_11 : i32
    %25 = arith.extui %24 : i1 to i32
    %c0_i32_12 = arith.constant 0 : i32
    %26 = arith.cmpi ne, %25, %c0_i32_12 : i32
    scf.if %26 {
      %c0_13 = arith.constant 0 : index
      %c0_14 = arith.constant 0 : index
      %27 = vector.load %arg4[%c0_13, %c0_14] : memref<8x4xbf16, #tpu.memory_space<vmem>>, vector<8x4xbf16>
      %c0_15 = arith.constant 0 : index
      %c0_16 = arith.constant 0 : index
      %28 = vector.load %arg7[%c0_15, %c0_16] : memref<4x128xf32, #tpu.memory_space<vmem>>, vector<4x128xf32>
      %29 = arith.truncf %28 : vector<4x128xf32> to vector<4x128xbf16>
      %cst_17 = arith.constant dense<0.000000e+00> : vector<8x128xf32>
      %30 = tpu.matmul %27, %29, %cst_17 {dimension_numbers = #tpu.dot_dimension_numbers<[1], [0], [0], [1], [0, 0, 1, 1], [], []>} : vector<8x4xbf16>, vector<4x128xbf16>, vector<8x128xf32> -> vector<8x128xf32>
      %c0_18 = arith.constant 0 : index
      %c0_19 = arith.constant 0 : index
      %c0_20 = arith.constant 0 : index
      %31 = vector.load %arg2[%c0_18, %c0_19, %c0_20] : memref<1x8x128xf32, #tpu.memory_space<vmem>>, vector<1x8x128xf32>
      %32 = vector.shape_cast %31 : vector<1x8x128xf32> to vector<8x128xf32>
      %33 = arith.addf %30, %32 : vector<8x128xf32>
      %c0_21 = arith.constant 0 : index
      %c0_22 = arith.constant 0 : index
      %c0_23 = arith.constant 0 : index
      %34 = vector.load %arg5[%c0_21, %c0_22, %c0_23] : memref<1x8x128xf32, #tpu.memory_space<vmem>>, vector<1x8x128xf32>
      %35 = vector.shape_cast %34 : vector<1x8x128xf32> to vector<8x128xf32>
      %36 = vector.shape_cast %33 : vector<8x128xf32> to vector<1x8x128xf32>
      tpu.vector_store %arg5[%c0_21, %c0_22, %c0_23], %36 {strides = array<i32>} : memref<1x8x128xf32, #tpu.memory_space<vmem>>, vector<1x8x128xf32>,
    } else {
    }
    return
  }
  func.func @transform_0(%arg0: i32, %arg1: i32) -> (i32, i32, i32) {
    %c0_i32 = arith.constant 0 : i32
    %c0_i32_0 = arith.constant 0 : i32
    %c0_i32_1 = arith.constant 0 : i32
    return %arg0, %c0_i32, %c0_i32_0 : i32, i32, i32
  }
  func.func @transform_1(%arg0: i32, %arg1: i32) -> (i32, i32) {
    %c0_i32 = arith.constant 0 : i32
    %c0_i32_0 = arith.constant 0 : i32
    %c0_i32_1 = arith.constant 0 : i32
    return %c0_i32, %c0_i32_0 : i32, i32
  }
  func.func @transform_2(%arg0: i32, %arg1: i32) -> (i32, i32) {
    %c0_i32 = arith.constant 0 : i32
    %c0_i32_0 = arith.constant 0 : i32
    %c0_i32_1 = arith.constant 0 : i32
    return %c0_i32, %c0_i32_0 : i32, i32
  }
  func.func @transform_3(%arg0: i32, %arg1: i32) -> (i32, i32, i32) {
    %c0_i32 = arith.constant 0 : i32
    %c0_i32_0 = arith.constant 0 : i32
    %c0_i32_1 = arith.constant 0 : i32
    return %arg0, %c0_i32, %c0_i32_0 : i32, i32, i32
  }
}

</mosaic_0001>

<bundles_post_ra>
// kernel: tpu_custom_call.1
= control target key start
LH: loop header
LB: loop body
LE: loop exit
PB: predicated region body
PF: predicated region fallthrough
CT: control target
= control target key end

     0   :  { %8 = vsyncpa [#allocation5], 0  ;;  %s1266_s0 = inlined_call_operand.vmem [shape: f32[2,8,128], index: 0, kind: input, shape index: {}]   ;;  %s1267_s1 = inlined_call_operand.vmem [shape: bf16[12,8], index: 1, kind: input, shape index: {}]   ;;  %s1268_s2 = inlined_call_operand.vmem [shape: bf16[8,4], index: 2, kind: input, shape index: {}]   ;;  %s1269_s3 = inlined_call_operand.hbm [shape: f32[2,8,128], index: 3, kind: output, shape index: {}]  }
   0x1   :  { %10 = vsyncpa [#allocation5 + $0x1], 0  ;;  %s1050_s12 = smov 0   ;;  %s1052_s13 = smov 0  }
   0x2   :  { %s1054_s14 = smov 0   ;;  %s1056_s15 = smov 0  }
   0x3   :  { %s1058_s16 = smov 0   ;;  %s1060_s17 = smov 0  }
   0x4 LB: > { %s739_s18 = sadd.s32 4294967295, %s1025_s17   ;;  %s740_s19 = sadd.s32 4294967294, %s1025_s17   ;;  %s1025_s17 = sphi %s1060_s17, %s16_s17   ;;  %s1021_s16 = sphi %s1058_s16, %s1276_s16   ;;  %s1017_s15 = sphi %s1056_s15, %s1275_s15   ;;  %s1013_s14 = sphi %s1054_s14, %s1274_s14   ;;  %s1009_s13 = sphi %s1052_s13, %s1273_s13   ;;  %s1005_s12 = sphi %s1050_s12, %s1272_s12  }
   0x5   : > { %s28_s20 = sadd.s32 1, %s1021_s16  ;;  %s103_s21 = sadd.s32 1, %s1013_s14 }
   0x6   : > { %p30_p0 = scmp.ge.s32.totalorder %s28_s20, 2  ;;  %p113_p1 = scmp.ne.s32.totalorder %s1013_s14, %s1009_s13 }
   0x7   : > { %p114_p2 = scmp.eq.s32.totalorder %s739_s18, 1  ;;  %p119_p3 = scmp.ne.s32.totalorder %s1009_s13, %s1005_s12 }
   0x8   : > { %s1278_s20 = smov (%p30_p0, %s28_s20), 0  ;;  %p120_p5 = scmp.eq.s32.totalorder %s740_s19, 1 }
   0x9   : > { %p1090_p4 = por %p114_p2, %p113_p1  ;;  %s100_s23 = ssub.s32 %s1021_s16, %s1278_s20 }
   0xa   : > { %p743_p6 = scmp.ge.s32.totalorder %s1025_s17, 1  ;;  %p101_p7 = scmp.eq.s32.totalorder %s100_s23, 0 }
   0xb   : > { %p1097_p8 = por %p120_p5, %p119_p3  ;;  %p151_p9 = scmp.lt.s32.totalorder %s1025_s17, 3 }
   0xc   : > { %s1103_s25 = scalar_select %p101_p7, %s1013_s14, %s103_s21  }
   0xd   : > { %p152_p10 = pnand %p743_p6, %p151_p9 }
   0xe   : > { %p174_p11 = scmp.lt.s32.totalorder (!%p152_p10), %s1017_s15, 1  ;;  %v1027_v0 = vmov (!%p152_p10), 0.0   ;;  %vm1028_vm0 = vmmov (!%p152_p10), 0   ;;  %vm196_vm1 = vcmask (!%p152_p10), 1043456   ;;  %v897_v4 = vld [vmem:[%s1267_s1] sm:$0x3f] (!%p152_p10)  }
   0xf   : > { %155 = sbr.rel (%p152_p10) target bundleno = 1401 (0x579), region = 32  ;;  %788 = vmatprep.subr.bf16.mxu0 (!%p152_p10), %v1027_v0  ;;  %251 = vst [vmem:[#allocation3] sm:$0xf] (!%p152_p10), %v1027_v0  ;;  %790 = vmatprep.mubr.msk.bf16.mxu0 (!%p152_p10), %vm1028_vm0, %v1027_v0  ;;  %vm192_vm2 = vcmask (!%p152_p10), 64512   ;;  %vm300_vm3 = vcmask (!%p152_p10), 1041408   ;;  %vm275_vm4 = vcmask (!%p152_p10), 31744  }
  0x10   : > { %s171_s8 = sand.u32 (!%p152_p10), 1, %s1009_s13   ;;  %s761_s10 = sshll.u32 (!%p152_p10), %s1017_s15, 7 }
  0x11   : > { %s744_s9 = sshll.u32 (!%p152_p10), %s171_s8, 3  ;;  %s1219_s23 = scalar_lea.hbm (!%p152_p10), %s1269_s3, %s761_s10 }
  0x12   : > { %s173_s11 = scalar_lea.vmem (!%p152_p10), [#allocation4], %s744_s9 }
  0x13   : > { %s672_s18 = sshll.u32 (!%p152_p10), %s173_s11, 4  ;;  %s1221_s18 = int_to_ptr.vmem [resolvable:$true] %s672_s18 }
  0x16   : > { %s175_s26 = scalar_select %p174_p11, %s1017_s15, 1 }
  0x17   : > { %s659_s15 = scalar_lea.sflag [#allocation5], %s171_s8 }
  0x18   : > { %s745_s27 = sshll.u32 %s175_s26, 3  ;;  %s947_s26 = scalar_lea.vmem %s1221_s18, 128 }
  0x19   : > { %s177_s30 = scalar_lea.vmem %s1266_s0, %s745_s27  ;;  %p948_p12 = scmp.ne.s32.totalorder %s1221_s18, %s947_s26 }
  0x1a   : > { %v1114_v1 = vld [vmem:[%s177_s30] sm:$0xff]  ;;  %s1029_s27 = smov [#allocation4]  }
  0x1b   : > { %v184_v2 = vpack.c.bf16 %v1114_v1, %v1114_v1  ;;  %p949_p13 = pnand %p948_p12, %p1090_p4  ;;  %s951_s28 = sshll.u32 %s1029_s27, 4  ;;  %s952_s28 = int_to_ptr.vmem [resolvable:$false] %s951_s28 }
  0x1c   : > { %s953_s29 = scalar_lea.vmem %s952_s28, 256  ;;  %p954_p1 = scmp.lt.s32.totalorder %s1221_s18, %s952_s28 }
  0x1d   : > { %v198_v3 = vsel %vm196_vm1, %v184_v2, 0  ;;  %p950_p0 = pneg %p949_p13  ;;  %p955_p2 = scmp.lt.s32.totalorder %s953_s29, %s947_s26 }
  0x1e   : > { %789 = vmatpush3.bf16.msra.mxu0 %v198_v3 }
  0x1f   : > { %812 = vmatprep.subr.bf16.mxu0 %v1027_v0  ;;  %p956_p3 = por %p955_p2, %p954_p1 }
  0x21   : > { %791 = vmatmul.mubr.msk.bf16.vlgmr.msra.gmra.mrb[0].mxu0 %vm192_vm2, %v897_v4  ;;  %p957_p5 = pnand %p956_p3, %p950_p0 }
  0x22   : > { %828 = vmatprep.mubr.msk.bf16.mxu0 %vm1028_vm0, %v1027_v0 }
  0xf4   : > { %v234_v5 = vpop.f32.mrb[0].mxu0 }
  0xf5   : > { %v764_v6 = vpack.c.bf16 %v234_v5, %v234_v5  ;;  %v792_v7 = vpop.f32.mrb[1].mxu0 }
  0xf6   : > { %v237_v8 = vpop.f32.mrb[2].mxu0 }
  0xf7   : > { %249 = vst [vmem:[#allocation2] sm:$0xf] %v764_v6  ;;  %v765_v9 = vpack.c.bf16 %v237_v8, %v237_v8  ;;  %v793_v10 = vpop.f32.mrb[3].mxu0 }
  0xf9   : > { %250 = vst [vmem:[#allocation2 + $0x4] sm:$0x3] %v765_v9 }
  0xfe   : > { %v253_v11 = vld [vmem:[#allocation2] sm:$0x3] }
  0xff   : > { %255 = vxpose.xlu0.c.b16.start.end [1/1] (short) %v253_v11, 128  ;;  %v898_v12 = vld [vmem:[#allocation2] ss:$0 sps:$4 sm:$0xcc]  }
 0x100   : > { %v274_v13 = vrot.slane %v898_v12, 2 }
 0x102   : > { %838 = vmatprep.subr.msk.bf16.mxu1 %vm300_vm3, %v274_v13  ;;  %v302_v14 = vsel %vm300_vm3, %v274_v13, 0 }
 0x103   : > { %795 = vmatpush3.bf16.msra.mxu1 %v302_v14 }
 0x104   : > { %832 = vmatprep.subr.bf16.mxu1 %v1027_v0 }
 0x165   : > { %v263_v15 = vpop.trf.xlu0 }
 0x166   : > { %796 = vmatprep.mubr.msk.bf16.mxu1 %vm275_vm4, %v263_v15 }
 0x169   : > { %v264_v16 = vpop.trf.xlu0 }
 0x16a   : > { %797 = vmatmul.mubr.msk.bf16.vlgmr.msra.gmra.mrb[0].mxu1 %vm275_vm4, %v264_v16 }
 0x16d   : > { %v265_v17 = vpop.trf.xlu0 }
 0x16e   : > { %800 = vmatprep.mubr.msk.bf16.mxu1 %vm275_vm4, %v265_v17 }
 0x171   : > { %v266_v18 = vpop.trf.xlu0 }
 0x172   : > { %801 = vmatmul.mubr.msk.bf16.gmra.mrb[4].mxu1 %vm275_vm4, %v266_v18 }
 0x175   : > { %v267_v19 = vpop.trf.xlu0 }
 0x176   : > { %804 = vmatprep.mubr.msk.bf16.mxu1 %vm275_vm4, %v267_v19 }
 0x179   : > { %v268_v20 = vpop.trf.xlu0 }
 0x17a   : > { %805 = vmatmul.mubr.msk.bf16.gmra.mrb[8].mxu1 %vm275_vm4, %v268_v20 }
 0x17d   : > { %v269_v21 = vpop.trf.xlu0 }
 0x17e   : > { %808 = vmatprep.mubr.msk.bf16.mxu1 %vm275_vm4, %v269_v21 }
 0x181   : > { %v270_v22 = vpop.trf.xlu0 }
 0x182   : > { %809 = vmatmul.mubr.msk.bf16.gmra.mrb[12].mxu1 %vm275_vm4, %v270_v22 }
 0x183   : > { %834 = vmatprep.mubr.msk.bf16.mxu1 %vm1028_vm0, %v1027_v0 }
 0x23d   : > { %v798_v23 = vpop.f32.mrb[0].mxu1 }
 0x23e   : > { %405 = vmax.xlane.f32.xlu1 %v798_v23  ;;  %v338_v24 = vpop.f32.mrb[1].mxu1 }
 0x23f   : > { %401 = vmax.xlane.f32.xlu0 %v338_v24  ;;  %v799_v25 = vpop.f32.mrb[2].mxu1 }
 0x240   : > { %v341_v26 = vpop.f32.mrb[3].mxu1 }
 0x242   : > { %407 = vmax.xlane.f32.xlu1 %v799_v25 }
 0x245   : > { %v802_v27 = vpop.f32.mrb[4].mxu1 }
 0x246   : > { %403 = vmax.xlane.f32.xlu1 %v341_v26  ;;  %v354_v28 = vpop.f32.mrb[5].mxu1 }
 0x247   : > { %v803_v29 = vpop.f32.mrb[6].mxu1 }
 0x248   : > { %v357_v30 = vpop.f32.mrb[7].mxu1 }
 0x24a   : > { %413 = vmax.xlane.f32.xlu1 %v802_v27 }
 0x24d   : > { %v1137_v31 = vpop.f32.mrb[8].mxu1 }
 0x24e   : > { %409 = vmax.xlane.f32.xlu1 %v354_v28  ;;  %v370_v32 = vpop.f32.mrb[9].mxu1 }
 0x24f   : > { %v1139_v33 = vpop.f32.mrb[10].mxu1 }
 0x250   : > { %v373_v34 = vpop.f32.mrb[11].mxu1 }
 0x252   : > { %415 = vmax.xlane.f32.xlu1 %v803_v29 }
 0x255   : > { %v1141_v35 = vpop.f32.mrb[12].mxu1 }
 0x256   : > { %411 = vmax.xlane.f32.xlu1 %v357_v30  ;;  %v1143_v36 = vpop.f32.mrb[13].mxu1 }
 0x257   : > { %v1145_v37 = vpop.f32.mrb[14].mxu1 }
 0x258   : > { %v1147_v38 = vpop.f32.mrb[15].mxu1 }
 0x259   : > { %427 = vmax.xlane.f32.xlu0 %v1147_v38 }
 0x25a   : > { %421 = vmax.xlane.f32.xlu1 %v1137_v31 }
 0x25d   : > { %431 = vmax.xlane.f32.xlu0 %v1145_v37 }
 0x25e   : > { %417 = vmax.xlane.f32.xlu1 %v370_v32 }
 0x262   : > { %419 = vmax.xlane.f32.xlu1 %v373_v34 }
 0x266   : > { %423 = vmax.xlane.f32.xlu1 %v1139_v33 }
 0x26a   : > { %425 = vmax.xlane.f32.xlu1 %v1143_v36 }
 0x26e   : > { %429 = vmax.xlane.f32.xlu1 %v1141_v35 }
 0x2cb   : > { %v406_v39 = vpop.xlane.xlu1 %405 }
 0x2cc   : > { %v435_v41 = vsub.f32 %v798_v23, %v406_v39  ;;  %v402_v43 = vpop.xlane.xlu0 %401 }
 0x2cd   : > { %v433_v46 = vsub.f32 %v338_v24, %v402_v43 }
 0x2cf   : > { %v408_v40 = vpop.xlane.xlu1 %407 }
 0x2d0   : > { %v436_v42 = vsub.f32 %v799_v25, %v408_v40 }
 0x2d2   : > { %v450_v44 = vpack.c.bf16 %v436_v42, %v435_v41 }
 0x2d3   : > { %v404_v45 = vpop.xlane.xlu1 %403 }
 0x2d4   : > { %v434_v47 = vsub.f32 %v341_v26, %v404_v45  ;;  %v461_v50 = vmul.bf16 1069105081, %v450_v44 }
 0x2d6   : > { %v449_v48 = vpack.c.bf16 %v434_v47, %v433_v46 }
 0x2d7   : > { %v414_v49 = vpop.xlane.xlu1 %413 }
 0x2d8   : > { %v458_v51 = vmul.bf16 1069105081, %v449_v48  ;;  %v439_v54 = vsub.f32 %v802_v27, %v414_v49 }
 0x2da   : > { %899 = vpow.bf16 %v458_v51 }
 0x2db   : > { %v410_v52 = vpop.xlane.xlu1 %409  ;;  %901 = vpow.bf16 %v461_v50 }
 0x2dc   : > { %v437_v58 = vsub.f32 %v354_v28, %v410_v52 }
 0x2df   : > { %v416_v53 = vpop.xlane.xlu1 %415 }
 0x2e0   : > { %v440_v55 = vsub.f32 %v803_v29, %v416_v53 }
 0x2e2   : > { %v452_v56 = vpack.c.bf16 %v440_v55, %v439_v54 }
 0x2e3   : > { %v412_v57 = vpop.xlane.xlu1 %411 }
 0x2e4   : > { %v438_v59 = vsub.f32 %v357_v30, %v412_v57  ;;  %v467_v4 = vmul.bf16 1069105081, %v452_v56 }
 0x2e5   : > { %v1155_v60 = vpop.eup %899 }
 0x2e6   : > { %v451_v61 = vpack.c.bf16 %v438_v59, %v437_v58  ;;  %v481_v62 = vunpack.c.l.bf16 %v1155_v60  ;;  %v482_v63 = vunpack.c.h.bf16 %v1155_v60  ;;  %v1159_v2 = vpop.eup %901  ;;  %v428_v13 = vpop.xlane.xlu0 %427 }
 0x2e7   : > { %v422_v3 = vpop.xlane.xlu1 %421  ;;  %v483_v6 = vunpack.c.l.bf16 %v1159_v2  ;;  %v484_v7 = vunpack.c.h.bf16 %v1159_v2  ;;  %v446_v24 = vsub.f32 %v1147_v38, %v428_v13 }
 0x2e8   : > { %v464_v5 = vmul.bf16 1069105081, %v451_v61  ;;  %497 = vadd.xlane.f32.xlu1 %v481_v62  ;;  %499 = vadd.xlane.f32.xlu0 %v482_v63  ;;  %v443_v15 = vsub.f32 %v1137_v31, %v422_v3 }
 0x2ea   : > { %903 = vpow.bf16 %v464_v5  ;;  %v432_v27 = vpop.xlane.xlu0 %431 }
 0x2eb   : > { %v418_v8 = vpop.xlane.xlu1 %417  ;;  %905 = vpow.bf16 %v467_v4 }
 0x2ec   : > { %501 = vadd.xlane.f32.xlu1 %v483_v6  ;;  %503 = vadd.xlane.f32.xlu0 %v484_v7  ;;  %v441_v10 = vsub.f32 %v370_v32, %v418_v8  ;;  %v448_v32 = vsub.f32 %v1145_v37, %v432_v27 }
 0x2ef   : > { %v420_v9 = vpop.xlane.xlu1 %419 }
 0x2f0   : > { %v442_v11 = vsub.f32 %v373_v34, %v420_v9 }
 0x2f2   : > { %v453_v12 = vpack.c.bf16 %v442_v11, %v441_v10 }
 0x2f3   : > { %v424_v14 = vpop.xlane.xlu1 %423 }
 0x2f4   : > { %v470_v16 = vmul.bf16 1069105081, %v453_v12  ;;  %v444_v17 = vsub.f32 %v1139_v33, %v424_v14 }
 0x2f5   : > { %v1165_v18 = vpop.eup %903 }
 0x2f6   : > { %907 = vpow.bf16 %v470_v16  ;;  %v454_v19 = vpack.c.bf16 %v444_v17, %v443_v15  ;;  %v485_v20 = vunpack.c.l.bf16 %v1165_v18  ;;  %v486_v21 = vunpack.c.h.bf16 %v1165_v18  ;;  %v1169_v22 = vpop.eup %905 }
 0x2f7   : > { %v426_v23 = vpop.xlane.xlu1 %425  ;;  %v487_v29 = vunpack.c.l.bf16 %v1169_v22  ;;  %v488_v30 = vunpack.c.h.bf16 %v1169_v22 }
 0x2f8   : > { %v473_v25 = vmul.bf16 1069105081, %v454_v19  ;;  %v445_v26 = vsub.f32 %v1143_v36, %v426_v23  ;;  %505 = vadd.xlane.f32.xlu1 %v485_v20  ;;  %507 = vadd.xlane.f32.xlu0 %v486_v21 }
 0x2fa   : > { %909 = vpow.bf16 %v473_v25  ;;  %v455_v28 = vpack.c.bf16 %v446_v24, %v445_v26 }
 0x2fb   : > { %v430_v31 = vpop.xlane.xlu1 %429 }
 0x2fc   : > { %v476_v33 = vmul.bf16 1069105081, %v455_v28  ;;  %v447_v34 = vsub.f32 %v1141_v35, %v430_v31  ;;  %509 = vadd.xlane.f32.xlu1 %v487_v29  ;;  %511 = vadd.xlane.f32.xlu0 %v488_v30 }
 0x2fe   : > { %911 = vpow.bf16 %v476_v33  ;;  %v456_v38 = vpack.c.bf16 %v448_v32, %v447_v34 }
 0x300   : > { %v479_v36 = vmul.bf16 1069105081, %v456_v38  ;;  %v254_v38 = vld [vmem:[#allocation2 + $0x4] sm:$0x3] }
 0x301   : > { %v1177_v39 = vpop.eup %907 }
 0x302   : > { %913 = vpow.bf16 %v479_v36  ;;  %v489_v40 = vunpack.c.l.bf16 %v1177_v39  ;;  %v490_v41 = vunpack.c.h.bf16 %v1177_v39  ;;  %v561_v36 = vld [vmem:[#allocation3] sm:$0xf] }
 0x304   : > { %513 = vadd.xlane.f32.xlu1 %v489_v40  ;;  %515 = vadd.xlane.f32.xlu0 %v490_v41 }
 0x305   : > { %v1181_v42 = vpop.eup %909 }
 0x306   : > { %v491_v37 = vunpack.c.l.bf16 %v1181_v42  ;;  %v492_v35 = vunpack.c.h.bf16 %v1181_v42 }
 0x308   : > { %517 = vadd.xlane.f32.xlu1 %v491_v37  ;;  %519 = vadd.xlane.f32.xlu0 %v492_v35 }
 0x309   : > { %v1185_v43 = vpop.eup %911 }
 0x30a   : > { %v494_v44 = vunpack.c.h.bf16 %v1185_v43  ;;  %v493_v45 = vunpack.c.l.bf16 %v1185_v43 }
 0x30c   : > { %523 = vadd.xlane.f32.xlu0 %v494_v44  ;;  %521 = vadd.xlane.f32.xlu1 %v493_v45 }
 0x30d   : > { %v1189_v46 = vpop.eup %913 }
 0x30e   : > { %v496_v47 = vunpack.c.h.bf16 %v1189_v46  ;;  %v495_v48 = vunpack.c.l.bf16 %v1189_v46 }
 0x310   : > { %527 = vadd.xlane.f32.xlu0 %v496_v47  ;;  %525 = vadd.xlane.f32.xlu1 %v495_v48 }
 0x375   : > { %v498_v49 = vpop.xlane.xlu1 %497  ;;  %v500_v50 = vpop.xlane.xlu0 %499 }
 0x376   : > { %915 = vrcp.f32 %v498_v49 }
 0x377   : > { %917 = vrcp.f32 %v500_v50 }
 0x379   : > { %v502_v51 = vpop.xlane.xlu1 %501  ;;  %v504_v52 = vpop.xlane.xlu0 %503 }
 0x37a   : > { %919 = vrcp.f32 %v502_v51 }
 0x37b   : > { %921 = vrcp.f32 %v504_v52 }
 0x380   : > { %v916_v53 = vpop.eup %915 }
 0x381   : > { %v918_v54 = vpop.eup %917 }
 0x382   : > { %v545_v55 = vpack.c.bf16 %v918_v54, %v916_v53 }
 0x384   : > { %v920_v56 = vpop.eup %919  ;;  %v553_v57 = vmul.bf16 %v1155_v60, %v545_v55 }
 0x385   : > { %v922_v58 = vpop.eup %921  ;;  %v506_v59 = vpop.xlane.xlu1 %505 }
 0x386   : > { %v508_v61 = vpop.xlane.xlu0 %507  ;;  %923 = vrcp.f32 %v506_v59  ;;  %813 = vmatpush3.bf16.msra.mxu0 %v553_v57  ;;  %v546_v62 = vpack.c.bf16 %v922_v58, %v920_v56 }
 0x387   : > { %925 = vrcp.f32 %v508_v61  ;;  %814 = vmatprep.subr.bf16.mxu0 %v1027_v0 }
 0x388   : > { %v554_v63 = vmul.bf16 %v1159_v2, %v546_v62 }
 0x389   : > { %v510_v3 = vpop.xlane.xlu1 %509 }
 0x38a   : > { %v512_v4 = vpop.xlane.xlu0 %511  ;;  %927 = vrcp.f32 %v510_v3  ;;  %815 = vmatpush3.bf16.msra.mxu0 %v554_v63 }
 0x38b   : > { %929 = vrcp.f32 %v512_v4  ;;  %816 = vmatprep.subr.bf16.mxu0 %v1027_v0 }
 0x390   : > { %v924_v5 = vpop.eup %923 }
 0x391   : > { %v926_v60 = vpop.eup %925  ;;  %v514_v6 = vpop.xlane.xlu1 %513 }
 0x392   : > { %v516_v7 = vpop.xlane.xlu0 %515  ;;  %931 = vrcp.f32 %v514_v6  ;;  %v547_v8 = vpack.c.bf16 %v926_v60, %v924_v5 }
 0x393   : > { %933 = vrcp.f32 %v516_v7 }
 0x394   : > { %v928_v9 = vpop.eup %927  ;;  %v555_v10 = vmul.bf16 %v1165_v18, %v547_v8 }
 0x395   : > { %v930_v11 = vpop.eup %929  ;;  %v518_v12 = vpop.xlane.xlu1 %517 }
 0x396   : > { %v520_v2 = vpop.xlane.xlu0 %519  ;;  %935 = vrcp.f32 %v518_v12  ;;  %817 = vmatpush3.bf16.msra.mxu0 %v555_v10  ;;  %v548_v13 = vpack.c.bf16 %v930_v11, %v928_v9 }
 0x397   : > { %937 = vrcp.f32 %v520_v2  ;;  %818 = vmatprep.subr.bf16.mxu0 %v1027_v0 }
 0x398   : > { %v556_v14 = vmul.bf16 %v1169_v22, %v548_v13 }
 0x399   : > { %v522_v15 = vpop.xlane.xlu1 %521 }
 0x39a   : > { %v524_v16 = vpop.xlane.xlu0 %523  ;;  %939 = vrcp.f32 %v522_v15  ;;  %819 = vmatpush3.bf16.msra.mxu0 %v556_v14 }
 0x39b   : > { %941 = vrcp.f32 %v524_v16  ;;  %820 = vmatprep.subr.bf16.mxu0 %v1027_v0 }
 0x39c   : > { %v932_v17 = vpop.eup %931 }
 0x39d   : > { %v934_v18 = vpop.eup %933  ;;  %v526_v19 = vpop.xlane.xlu1 %525 }
 0x39e   : > { %v528_v20 = vpop.xlane.xlu0 %527  ;;  %943 = vrcp.f32 %v526_v19  ;;  %v549_v21 = vpack.c.bf16 %v934_v18, %v932_v17 }
 0x39f   : > { %945 = vrcp.f32 %v528_v20 }
 0x3a0   : > { %v936_v23 = vpop.eup %935  ;;  %v557_v24 = vmul.bf16 %v1177_v39, %v549_v21 }
 0x3a1   : > { %v938_v25 = vpop.eup %937 }
 0x3a2   : > { %821 = vmatpush3.bf16.msra.mxu0 %v557_v24  ;;  %v550_v22 = vpack.c.bf16 %v938_v25, %v936_v23 }
 0x3a3   : > { %822 = vmatprep.subr.bf16.mxu0 %v1027_v0 }
 0x3a4   : > { %v940_v26 = vpop.eup %939  ;;  %v558_v27 = vmul.bf16 %v1181_v42, %v550_v22 }
 0x3a5   : > { %v942_v28 = vpop.eup %941 }
 0x3a6   : > { %823 = vmatpush3.bf16.msra.mxu0 %v558_v27  ;;  %v551_v29 = vpack.c.bf16 %v942_v28, %v940_v26 }
 0x3a7   : > { %824 = vmatprep.subr.bf16.mxu0 %v1027_v0 }
 0x3a8   : > { %v944_v30 = vpop.eup %943  ;;  %v559_v31 = vmul.bf16 %v1185_v43, %v551_v29 }
 0x3a9   : > { %v946_v32 = vpop.eup %945 }
 0x3aa   : > { %825 = vmatpush3.bf16.msra.mxu0 %v559_v31  ;;  %v552_v33 = vpack.c.bf16 %v946_v32, %v944_v30 }
 0x3ab   : > { %826 = vmatprep.subr.bf16.mxu0 %v1027_v0  ;;  %v607_v0 = vld [vmem:[%s1268_s2] sm:$0xf] }
 0x3ac   : > { %v560_v34 = vmul.bf16 %v1189_v46, %v552_v33 }
 0x3ae   : > { %827 = vmatpush3.bf16.msra.mxu0 %v560_v34 }
 0x3b1   : > { %829 = vmatmul.mubr.bf16.vlgmr.msra.gmra.mrb[4].mxu0 %v254_v38 }
 0x484   : > { %v596_v39 = vpop.f32.mrb[4].mxu0 }
 0x485   : > { %v602_v40 = vadd.f32 %v596_v39, %v561_v36  ;;  %v830_v41 = vpop.f32.mrb[5].mxu0 }
 0x486   : > { %v599_v42 = vpop.f32.mrb[6].mxu0 }
 0x487   : > { %603 = vst [vmem:[#allocation3] sm:$0xf] %v602_v40  ;;  %v831_v37 = vpop.f32.mrb[7].mxu0 }
 0x48e   : > { %v608_v35 = vld [vmem:[#allocation3] sm:$0xf] }
 0x48f   : > { %v609_v43 = vpack.c.bf16 %v608_v35, %v608_v35 }
 0x491   : > { %v615_v44 = vsel %vm300_vm3, %v609_v43, 0 }
 0x492   : > { %833 = vmatpush3.bf16.msra.mxu1 %v615_v44 }
 0x495   : > { %835 = vmatmul.mubr.msk.bf16.vlgmr.msra.gmra.mrb[16].mxu1 %vm275_vm4, %v607_v0 }
 0x568   : > { %v651_v45 = vpop.f32.mrb[16].mxu1 }
 0x569   : > { %v652_v46 = vadd.f32 %v651_v45, %v1114_v1  ;;  %v836_v47 = vpop.f32.mrb[17].mxu1 }
 0x56a   : > { %v654_v48 = vpop.f32.mrb[18].mxu1 }
 0x56b   : > { %657 = vst [vmem:[%s173_s11] sm:$0xff] %v652_v46  ;;  %v837_v49 = vpop.f32.mrb[19].mxu1 }
 0x56c   : > { %960 = shalt.err (!%p957_p5)
}
 0x56d   : > { %s961_s30 = scalar_lea.hbm %s1219_s23, 128  ;;  %s965_s6 = scalar_lea.hbm %s1269_s3, 256 }
 0x56e   : > { %p962_p6 = scmp.ne.s32.totalorder %s1219_s23, %s961_s30  ;;  %p966_p10 = scmp.lt.u32.totalorder %s1219_s23, %s1269_s3 }
 0x56f   : > { %p967_p11 = scmp.lt.u32.totalorder %s965_s6, %s961_s30  ;;  %p969_p13 = scmp.lt.u32.totalorder %s961_s30, %s1219_s23 }
 0x570   : > { %p963_p7 = pnand %p962_p6, %p1090_p4 }
 0x571   : > { %p968_p12 = por %p967_p11, %p966_p10 }
 0x572   : > { %p964_p9 = pneg %p963_p7 }
 0x573   : > { %p970_p0 = por %p969_p13, %p968_p12 }
 0x575   : > { %p971_p1 = pnand %p970_p0, %p964_p9 }
 0x577   : > { %974 = shalt.err (!%p971_p1)
}
 0x578   : > { %839 = dma.vmem_to_hbm [thread:$0]  (%p1090_p4), %s1221_s18, 128, %s1219_s23, %s659_s15  }
 0x579 PF: > { %p845_p2 = scmp.ge.s32.totalorder %s1025_s17, 2  ;;  %s684_s9 = sand.u32 1, %s1005_s12  }
 0x57a   : > { %s685_s10 = scalar_lea.sflag [#allocation5], %s684_s9 }
 0x57b   : > { %p842_p3 = pnand %p845_p2, %p1097_p8 }
 0x57d   : > { %1000 = dma.done.wait (!%p842_p3), %s685_s10, 128  }
 0x57e   : > { %1002 = vsyncadd (!%p842_p3), %s685_s10, 4294967168  ;;  %s16_s17 = sadd.s32 1, %s1025_s17   ;;  %s1272_s12 = smov %s1009_s13 }
 0x57f   : > { %p13_p5 = scmp.ge.s32.totalorder %s16_s17, 4   ;;  %s1273_s13 = smov %s1013_s14 }
 0x580   : > { %s1274_s14 = smov %s1103_s25  ;;  %s1275_s15 = smov %s1021_s16 }
 0x581   : > { %s1276_s16 = smov %s1278_s20  ;;  %15 = sbr.rel (!%p13_p5) target bundleno = 4 (0x4), region = 75 }
 0x588   :  { %690 = vsyncpa [#allocation5], 1 }
 0x589   :  { %692 = vsyncpa [#allocation5 + $0x1], 1 }

</bundles_post_ra>
